<compile_context>
chip_gen: v7x
topology: tpu7x:2x2x1
jax: 0.10.0
libtpu: 0.0.40
codegen_flags: <defaults>
</compile_context>

<pallas_src>
import jax
import jax.numpy as jnp
from jax.experimental import pallas as pl
from jax.experimental.pallas import tpu as pltpu


def _bert_pooler_kernel(x_ref, w_ref, b_ref, o_ref):
    # x_ref: (tm, H) input dtype; w_ref: (H, Hout) param dtype (resident block);
    # b_ref: (1, Hout) f32; o_ref: (tm, Hout) output dtype.
    x = x_ref[...].astype(jnp.bfloat16)          # MXU operands in bf16
    w = w_ref[...].astype(jnp.bfloat16)          # no-op if the param is stored in bf16
    acc = jnp.dot(x, w, preferred_element_type=jnp.float32)   # MXU matmul, f32 accumulate
    acc = acc + b_ref[...]                                     # bias add in f32
    o_ref[...] = jnp.tanh(acc).astype(o_ref.dtype)             # tanh on EUP, f32 math


def bert_pooler(hidden_states, weight, bias, *, tm=512):
    """hidden_states: [B, S, H]; weight: [H, Hout] (x @ W layout, i.e. torch weight.T);
    bias: [Hout].  Returns tanh(hidden_states[:, 0] @ W + b) with shape [B, Hout]."""
    B, S, H = hidden_states.shape
    Hin, Hout = weight.shape
    assert Hin == H, (Hin, H)
    out_dtype = hidden_states.dtype

    # First-token ("pooling") selection outside the kernel: a cheap strided slice so only
    # B*H elements are ever DMA'd into VMEM.
    # TODO(synk): fuse the [:, 0] select into the BlockSpec (needs a size-1 second-to-last
    # block dim over the seq axis, which violates the (8,128) layout rule for general S/H).
    x = hidden_states[:, 0, :]                    # [B, H]

    # Row tile: one full-batch tile for small B (block == full dim is always layout-legal),
    # 512-row tiles for large B; the last ragged block is masked by Pallas, so no pad /
    # slice-back round-trips.
    tm_eff = tm if B >= tm else B
    grid = (pl.cdiv(B, tm_eff),)

    # Bias as a (1, Hout) f32 row so the epilogue math stays in f32 (tiny, one-time cast).
    b2d = bias.reshape(1, Hout).astype(jnp.float32)

    x_item = jnp.dtype(x.dtype).itemsize
    w_item = jnp.dtype(weight.dtype).itemsize
    o_item = jnp.dtype(out_dtype).itemsize

    # Resident weight block => weight read from HBM exactly once.
    cost = pl.CostEstimate(
        flops=2 * B * H * Hout,
        transcendentals=B * Hout,                         # tanh
        bytes_accessed=(B * H * x_item                    # pooled rows (read once)
                        + H * Hout * w_item               # weight (read once)
                        + Hout * 4                        # bias
                        + B * Hout * o_item),             # output
    )

    # VMEM budget: double-buffered x/out tiles + resident weight + bias, plus headroom.
    # Cap well below v7x's 64 MiB physical VMEM per core.
    vmem_est = (2 * (tm_eff * H * x_item + tm_eff * Hout * o_item + Hout * 4)
                + 2 * H * Hout * w_item + (4 << 20))
    vmem_limit = int(min(max(vmem_est, 32 << 20), 48 << 20))

    out = pl.pallas_call(
        _bert_pooler_kernel,
        out_shape=jax.ShapeDtypeStruct((B, Hout), out_dtype),
        grid=grid,
        in_specs=[
            pl.BlockSpec((tm_eff, H), lambda i: (i, 0)),   # pooled-token rows (streamed)
            pl.BlockSpec((H, Hout), lambda i: (0, 0)),     # whole weight (resident)
            pl.BlockSpec((1, Hout), lambda i: (0, 0)),     # bias (resident)
        ],
        out_specs=pl.BlockSpec((tm_eff, Hout), lambda i: (i, 0)),
        compiler_params=pltpu.CompilerParams(
            dimension_semantics=("arbitrary",),            # don't duplicate weight DMA across TCs
            vmem_limit_bytes=vmem_limit,
        ),
        cost_estimate=cost,
    )(x, weight, b2d)
    return out


def _reference_f32(hidden_states, weight, bias):
    x0 = hidden_states[:, 0, :]
    return jnp.tanh(x0 @ weight + bias)


if __name__ == "__main__":
    # Small, module-consistent shapes: batch=2, seq=8, hidden=32.
    B, S, H = 2, 8, 32
    key = jax.random.PRNGKey(0)
    kx, kw, kb = jax.random.split(key, 3)

    hidden_states = jax.random.normal(kx, (B, S, H), dtype=jnp.float32)
    # Deterministic "Linear(hidden_size, hidden_size)" params (weight is torch_weight.T).
    weight = jax.random.normal(kw, (H, H), dtype=jnp.float32) * 0.02
    bias = jax.random.normal(kb, (H,), dtype=jnp.float32) * 0.02

    out = bert_pooler(hidden_states, weight, bias)
    jax.block_until_ready(out)
    assert out.shape == (B, H)

    # Reference with identical bf16-matmul / f32-epilogue semantics.
    x0 = hidden_states[:, 0, :]
    ref_bf16 = jnp.tanh(
        jnp.dot(x0.astype(jnp.bfloat16), weight.astype(jnp.bfloat16),
                preferred_element_type=jnp.float32) + bias).astype(out.dtype)
    assert jnp.allclose(out, ref_bf16, atol=1e-4, rtol=1e-4), \
        float(jnp.max(jnp.abs(out - ref_bf16)))

    # Sanity check against the full-f32 torch-equivalent reference (bf16 tolerance).
    ref_f32 = _reference_f32(hidden_states, weight, bias)
    assert jnp.allclose(out, ref_f32, atol=5e-2, rtol=5e-2)

    # Second check: multi-tile grid with a ragged last row block (exercises the
    # resident-weight / masked-tail path).  Still small in absolute size.
    B2, S2, H2 = 600, 4, 256
    k2x, k2w, k2b = jax.random.split(jax.random.PRNGKey(1), 3)
    hs2 = jax.random.normal(k2x, (B2, S2, H2), dtype=jnp.float32)
    w2 = jax.random.normal(k2w, (H2, H2), dtype=jnp.float32) * 0.02
    b2 = jax.random.normal(k2b, (H2,), dtype=jnp.float32) * 0.02
    out2 = bert_pooler(hs2, w2, b2, tm=512)
    jax.block_until_ready(out2)
    assert out2.shape == (B2, H2)
    assert jnp.allclose(out2, _reference_f32(hs2, w2, b2), atol=3e-2, rtol=3e-2)

    print("KERNEL_OK")
</pallas_src>

<mosaic_0001>
module attributes {stable_mosaic.version = 11 : i64} {
  func.func @_bert_pooler_kernel(%arg0: i32, %arg1: memref<2x32xf32, #tpu.memory_space<vmem>>, %arg2: memref<32x32xf32, #tpu.memory_space<vmem>>, %arg3: memref<1x32xf32, #tpu.memory_space<vmem>>, %arg4: memref<2x32xf32, #tpu.memory_space<vmem>>) attributes {dimension_semantics = [#tpu.dimension_semantics<arbitrary>], iteration_bounds = array<i64: 1>, scalar_prefetch = 0 : i64, scratch_operands = 0 : i64, tpu.core_type = #tpu.core_type<tc>, window_params = [{transform_indices = @transform_0, window_bounds = array<i64: 2, 32>}, {pipeline_mode = #tpu.pipeline_mode<synchronous>, transform_indices = @transform_1, window_bounds = array<i64: 32, 32>}, {pipeline_mode = #tpu.pipeline_mode<synchronous>, transform_indices = @transform_2, window_bounds = array<i64: 1, 32>}, {transform_indices = @transform_3, window_bounds = array<i64: 2, 32>}]} {
    %c0 = arith.constant 0 : index
    %c0_0 = arith.constant 0 : index
    %0 = vector.load %arg1[%c0, %c0_0] : memref<2x32xf32, #tpu.memory_space<vmem>>, vector<2x32xf32>
    %1 = arith.truncf %0 : vector<2x32xf32> to vector<2x32xbf16>
    %c0_1 = arith.constant 0 : index
    %c0_2 = arith.constant 0 : index
    %2 = vector.load %arg2[%c0_1, %c0_2] : memref<32x32xf32, #tpu.memory_space<vmem>>, vector<32x32xf32>
    %3 = arith.truncf %2 : vector<32x32xf32> to vector<32x32xbf16>
    %cst = arith.constant dense<0.000000e+00> : vector<2x32xf32>
    %4 = tpu.matmul %1, %3, %cst {dimension_numbers = #tpu.dot_dimension_numbers<[1], [0], [0], [1], [0, 0, 1, 1], [], []>} : vector<2x32xbf16>, vector<32x32xbf16>, vector<2x32xf32> -> vector<2x32xf32>
    %c0_3 = arith.constant 0 : index
    %c0_4 = arith.constant 0 : index
    %5 = vector.load %arg3[%c0_3, %c0_4] : memref<1x32xf32, #tpu.memory_space<vmem>>, vector<1x32xf32>
    %6 = vector.broadcast %5 : vector<1x32xf32> to vector<2x32xf32>
    %7 = arith.addf %4, %6 : vector<2x32xf32>
    %8 = math.tanh %7 : vector<2x32xf32>
    %c0_5 = arith.constant 0 : index
    %c0_6 = arith.constant 0 : index
    %9 = vector.load %arg4[%c0_5, %c0_6] : memref<2x32xf32, #tpu.memory_space<vmem>>, vector<2x32xf32>
    tpu.vector_store %arg4[%c0_5, %c0_6], %8 {strides = array<i32>} : memref<2x32xf32, #tpu.memory_space<vmem>>, vector<2x32xf32>,
    return
  }
  func.func @transform_0(%arg0: i32) -> (i32, i32) {
    %c0_i32 = arith.constant 0 : i32
    %c0_i32_0 = arith.constant 0 : i32
    return %arg0, %c0_i32 : i32, i32
  }
  func.func @transform_1(%arg0: i32) -> (i32, i32) {
    %c0_i32 = arith.constant 0 : i32
    %c0_i32_0 = arith.constant 0 : i32
    %c0_i32_1 = arith.constant 0 : i32
    return %c0_i32, %c0_i32_0 : i32, i32
  }
  func.func @transform_2(%arg0: i32) -> (i32, i32) {
    %c0_i32 = arith.constant 0 : i32
    %c0_i32_0 = arith.constant 0 : i32
    %c0_i32_1 = arith.constant 0 : i32
    return %c0_i32, %c0_i32_0 : i32, i32
  }
  func.func @transform_3(%arg0: i32) -> (i32, i32) {
    %c0_i32 = arith.constant 0 : i32
    %c0_i32_0 = arith.constant 0 : i32
    return %arg0, %c0_i32 : i32, i32
  }
}

</mosaic_0001>

<bundles_post_ra>
// kernel: tpu_custom_call.1
= control target key start
LH: loop header
LB: loop body
LE: loop exit
PB: predicated region body
PF: predicated region fallthrough
CT: control target
= control target key end

     0   :  { %8 = vsyncpa [#allocation3], 0  ;;  %s287_s0 = inlined_call_operand.hbm [shape: f32[2,32], index: 0, kind: input, shape index: {}]   ;;  %s288_s1 = inlined_call_operand.hbm [shape: f32[32,32], index: 1, kind: input, shape index: {}]   ;;  %s289_s2 = inlined_call_operand.vmem [shape: f32[1,32], index: 2, kind: input, shape index: {}]   ;;  %s290_s3 = inlined_call_operand.hbm [shape: f32[2,32], index: 3, kind: output, shape index: {}]  }
   0x1   :  { %9 = vsyncpa [#allocation6], 0 }
   0x2   :  { %10 = vsyncpa [#allocation4], 0  ;;  %s214_s12 = smov [#allocation2]   ;;  %s215_s14 = smov [#allocation5]  }
   0x3   :  { %s17_s13 = sshll.u32 %s214_s12, 4  ;;  %s26_s15 = sshll.u32 %s215_s14, 4  ;;  %s18_s13 = int_to_ptr.vmem [resolvable:$true] %s17_s13  ;;  %s241_s15 = int_to_ptr.vmem [resolvable:$true] %s26_s15 }
   0x4   :  { %s142_s18 = scalar_lea.hbm %s287_s0, 32 }
   0x5   :  { %p143_p0 = scmp.ne.s32.totalorder %s287_s0, %s142_s18  ;;  %p146_p1 = scmp.lt.u32.totalorder %s142_s18, %s287_s0 }
   0x7   :  { %p148_p2 = pnand %p146_p1, %p143_p0 }
   0x9   :  { %151 = shalt.err (!%p148_p2)
}
   0xa   :  { %s152_s23 = scalar_lea.vmem %s18_s13, 32  ;;  %p157_p4 = scmp.lt.s32.totalorder %s18_s13, %s18_s13 }
   0xb   :  { %p153_p3 = scmp.ne.s32.totalorder %s18_s13, %s152_s23  ;;  %p158_p5 = scmp.lt.s32.totalorder %s152_s23, %s152_s23 }
   0xd   :  { %p159_p6 = por %p158_p5, %p157_p4 }
   0xf   :  { %p160_p7 = pnand %p159_p6, %p153_p3 }
  0x11   :  { %163 = shalt.err (!%p160_p7)
}
  0x12   :  { %20 = dma.hbm_to_vmem [thread:$0]  %s287_s0, 32, %s18_s13, [#allocation3]  }
  0x13   :  { %s164_s28 = scalar_lea.hbm %s288_s1, 512 }
  0x14   :  { %p165_p8 = scmp.ne.s32.totalorder %s288_s1, %s164_s28  ;;  %p168_p9 = scmp.lt.u32.totalorder %s164_s28, %s288_s1 }
  0x16   :  { %p170_p10 = pnand %p168_p9, %p165_p8 }
  0x18   :  { %173 = shalt.err (!%p170_p10)
}
  0x19   :  { %s174_s6 = scalar_lea.vmem %s241_s15, 512  ;;  %p179_p12 = scmp.lt.s32.totalorder %s241_s15, %s241_s15 }
  0x1a   :  { %p175_p11 = scmp.ne.s32.totalorder %s241_s15, %s174_s6  ;;  %p180_p13 = scmp.lt.s32.totalorder %s174_s6, %s174_s6 }
  0x1c   :  { %p181_p0 = por %p180_p13, %p179_p12 }
  0x1e   :  { %p182_p1 = pnand %p181_p0, %p175_p11 }
  0x20   :  { %185 = shalt.err (!%p182_p1)
}
  0x21   :  { %s216_s0 = smov 128   ;;  %s217_s7 = smov 8  }
  0x22   :  { %32 = dma.hbm_to_vmem [thread:$0]  %s288_s1, 512, %s241_s15, [#allocation6], %s216_s0, %s216_s0, %s217_s7  }
  0x23   :  { %208 = dma.done.wait [#allocation3], 32  }
  0x24   :  { %209 = vsyncadd [#allocation3], 4294967264 }
  0x25   :  { %210 = dma.done.wait [#allocation6], 512  }
  0x26   :  { %211 = vsyncadd [#allocation6], 4294966784  ;;  %v218_v0 = vmov 0.0   ;;  %vm219_vm0 = vmmov 0   ;;  %v44_v1 = vld [vmem:[#allocation5] sm:$0xff]  ;;  %v45_v2 = vld [vmem:[#allocation5 + $0x8] sm:$0xff] }
  0x27   :  { %125 = vmatprep.subr.bf16.mxu0 %v218_v0  ;;  %129 = vmatprep.mubr.msk.bf16.mxu0 %vm219_vm0, %v218_v0  ;;  %v46_v3 = vld [vmem:[#allocation5 + $0x10] sm:$0xff]  ;;  %v48_v4 = vpack.c.bf16 %v45_v2, %v44_v1  ;;  %v47_v5 = vld [vmem:[#allocation5 + $0x18] sm:$0xff]  ;;  %vm57_vm1 = vcmask 261120   ;;  %s220_s11 = smov [#allocation7]   ;;  %vm102_vm2 = vcmask 254976  }
  0x28   :  { %v49_v6 = vpack.c.bf16 %v47_v5, %v46_v3  ;;  %v42_v7 = vld [vmem:[#allocation2] sm:$0x3]  ;;  %s110_s12 = sshll.u32 %s220_s11, 4  ;;  %s111_s12 = int_to_ptr.vmem [resolvable:$true] %s110_s12 }
  0x29   :  { %126 = vmatpush3.bf16.msra.mxu0 %v48_v4  ;;  %v43_v8 = vpack.c.bf16 %v42_v7, %v42_v7  ;;  %v120_v9 = vld [vmem:[%s289_s2] ss:$0 sm:$0xff]  ;;  %s186_s13 = scalar_lea.vmem %s111_s12, 32  ;;  %p191_p3 = scmp.lt.s32.totalorder %s111_s12, %s111_s12 }
  0x2a   :  { %127 = vmatprep.subr.bf16.mxu0 %v218_v0  ;;  %p187_p2 = scmp.ne.s32.totalorder %s111_s12, %s186_s13  ;;  %p192_p4 = scmp.lt.s32.totalorder %s186_s13, %s186_s13 }
  0x2c   :  { %p193_p5 = por %p192_p4, %p191_p3 }
  0x2d   :  { %128 = vmatpush3.bf16.msra.mxu0 %v49_v6 }
  0x2e   :  { %p194_p6 = pnand %p193_p5, %p187_p2 }
  0x30   :  { %130 = vmatmul.mubr.msk.bf16.vlgmr.msra.gmra.mrb[0].mxu0 %vm57_vm1, %v43_v8 }
 0x103   :  { %v95_v10 = vpop.f32.mrb[0].mxu0 }
 0x104   :  { %v96_v11 = vadd.f32 %v120_v9, %v95_v10  ;;  %v131_v12 = vpop.f32.mrb[1].mxu0 }
 0x105   :  { %v98_v13 = vpop.f32.mrb[2].mxu0 }
 0x106   :  { %140 = vtanh.f32 %v96_v11  ;;  %v132_v14 = vpop.f32.mrb[3].mxu0 }
 0x110   :  { %v141_v15 = vpop.eup %140 }
 0x111   :  { %103 = vst.msk [vmem:[#allocation7] sm:$0x3] %vm102_vm2, %v141_v15 }
 0x112   :  { %197 = shalt.err (!%p194_p6)
}
 0x113   :  { %s198_s15 = scalar_lea.hbm %s290_s3, 32 }
 0x114   :  { %p199_p7 = scmp.ne.s32.totalorder %s290_s3, %s198_s15  ;;  %p202_p8 = scmp.lt.u32.totalorder %s198_s15, %s290_s3 }
 0x116   :  { %p204_p9 = pnand %p202_p8, %p199_p7 }
 0x118   :  { %207 = shalt.err (!%p204_p9)
}
 0x119   :  { %113 = dma.vmem_to_hbm [thread:$0]  %s111_s12, 32, %s290_s3, [#allocation4]  }
 0x11a   :  { %212 = dma.done.wait [#allocation4], 32  }
 0x11b   :  { %213 = vsyncadd [#allocation4], 4294967264 }
 0x11c   :  { %117 = vsyncpa [#allocation3], 1 }
 0x11d   :  { %118 = vsyncpa [#allocation6], 1 }
 0x11e   :  { %119 = vsyncpa [#allocation4], 1 }

</bundles_post_ra>
